<compile_context>
chip_gen: v5e
topology: v5e:2x2
jax: 0.10.0
libtpu: 0.0.40
codegen_flags: <defaults>
</compile_context>

<pallas_src>
import jax
import jax.numpy as jnp
from jax.experimental import pallas as pl
from jax.experimental.pallas import tpu as pltpu

HIDDEN = 32   # __C.HIDDEN_SIZE
FF = 128      # __C.FF_SIZE


# ----------------------------------------------------------------------------
# Kernel: one block = (rows, HIDDEN) slab of the flattened (B*S, HIDDEN) input.
# ----------------------------------------------------------------------------

def _ffn_kernel(x_ref, w1_ref, b1_ref, w2_ref, b2_ref, out_ref):
    x = x_ref[...]                                                  # (rows, H)
    h = jnp.dot(x, w1_ref[...], preferred_element_type=jnp.float32) + b1_ref[...]
    h = jnp.maximum(h, 0.0)                       # ReLU; dropout = identity (eval)
    out_ref[...] = (jnp.dot(h, w2_ref[...], preferred_element_type=jnp.float32)
                    + b2_ref[...])


# ----------------------------------------------------------------------------
# Wrapper
# ----------------------------------------------------------------------------

def ffn(x, params, *, row_tile=512):
    """x: (B, S, HIDDEN) float32 -> (B, S, HIDDEN) float32."""
    B, S, H = x.shape
    assert H == HIDDEN
    R = B * S
    x2 = x.reshape(R, H)          # fold batch+seq into the matmul row dimension

    # Single block for small problems; row-tiled grid for large ones so v7x can
    # split rows across both TensorCores. row_tile stays a multiple of 8
    # (sublane granule); fall back to one block if R doesn't tile evenly.
    if R <= row_tile or R % row_tile != 0:
        row_tile = R
    grid = (R // row_tile,)

    flops = 4 * R * H * FF                          # two matmuls, 2*M*N*K each
    bytes_accessed = 4 * (2 * R * H + 2 * H * FF + FF + H)

    out2 = pl.pallas_call(
        _ffn_kernel,
        out_shape=jax.ShapeDtypeStruct((R, H), jnp.float32),
        grid=grid,
        in_specs=[
            pl.BlockSpec((row_tile, H), lambda i: (i, 0)),   # activations
            pl.BlockSpec((H, FF), lambda i: (0, 0)),         # W1 (resident)
            pl.BlockSpec((1, FF), lambda i: (0, 0)),         # b1
            pl.BlockSpec((FF, H), lambda i: (0, 0)),         # W2
            pl.BlockSpec((1, H), lambda i: (0, 0)),          # b2
        ],
        out_specs=pl.BlockSpec((row_tile, H), lambda i: (i, 0)),
        compiler_params=pltpu.CompilerParams(
            dimension_semantics=("parallel",)),
        cost_estimate=pl.CostEstimate(flops=flops, transcendentals=0,
                                      bytes_accessed=bytes_accessed),
    )(x2, params["w1"], params["b1"], params["w2"], params["b2"])
    return out2.reshape(B, S, H)


# ----------------------------------------------------------------------------
# Pure-JAX reference (same math, no Pallas) for a correctness check
# ----------------------------------------------------------------------------

def ffn_ref(x, params):
    h = jnp.maximum(x @ params["w1"] + params["b1"][0], 0.0)
    return h @ params["w2"] + params["b2"][0]


# ----------------------------------------------------------------------------
# Deterministic parameter init + demo
# ----------------------------------------------------------------------------

def init_params(key):
    k1, k2, k3, k4 = jax.random.split(key, 4)
    return {
        "w1": 0.05 * jax.random.normal(k1, (HIDDEN, FF), jnp.float32),
        "b1": 0.01 * jax.random.normal(k2, (1, FF), jnp.float32),
        "w2": 0.05 * jax.random.normal(k3, (FF, HIDDEN), jnp.float32),
        "b2": 0.01 * jax.random.normal(k4, (1, HIDDEN), jnp.float32),
    }


if __name__ == "__main__":
    B, S = 2, 8
    key = jax.random.PRNGKey(0)
    kx, kp = jax.random.split(key, 2)

    x = jax.random.normal(kx, (B, S, HIDDEN), jnp.float32)
    params = init_params(kp)

    out = ffn(x, params)
    out = jax.block_until_ready(out)

    ref = ffn_ref(x, params)
    assert out.shape == (B, S, HIDDEN)
    assert jnp.allclose(out, ref, atol=1e-4, rtol=1e-4), "mismatch vs JAX reference"

    print("KERNEL_OK")
</pallas_src>

<mosaic_0001>
module attributes {stable_mosaic.version = 11 : i64} {
  func.func @_ffn_kernel(%arg0: i32, %arg1: memref<16x32xf32, #tpu.memory_space<vmem>>, %arg2: memref<32x128xf32, #tpu.memory_space<vmem>>, %arg3: memref<1x128xf32, #tpu.memory_space<vmem>>, %arg4: memref<128x32xf32, #tpu.memory_space<vmem>>, %arg5: memref<1x32xf32, #tpu.memory_space<vmem>>, %arg6: memref<16x32xf32, #tpu.memory_space<vmem>>) attributes {dimension_semantics = [#tpu.dimension_semantics<parallel>], iteration_bounds = array<i64: 1>, scalar_prefetch = 0 : i64, scratch_operands = 0 : i64, tpu.core_type = #tpu.core_type<tc>, window_params = [{transform_indices = @transform_0, window_bounds = array<i64: 16, 32>}, {pipeline_mode = #tpu.pipeline_mode<synchronous>, transform_indices = @transform_1, window_bounds = array<i64: 32, 128>}, {pipeline_mode = #tpu.pipeline_mode<synchronous>, transform_indices = @transform_2, window_bounds = array<i64: 1, 128>}, {pipeline_mode = #tpu.pipeline_mode<synchronous>, transform_indices = @transform_3, window_bounds = array<i64: 128, 32>}, {pipeline_mode = #tpu.pipeline_mode<synchronous>, transform_indices = @transform_4, window_bounds = array<i64: 1, 32>}, {transform_indices = @transform_5, window_bounds = array<i64: 16, 32>}]} {
    %c0 = arith.constant 0 : index
    %c0_0 = arith.constant 0 : index
    %0 = vector.load %arg1[%c0, %c0_0] : memref<16x32xf32, #tpu.memory_space<vmem>>, vector<16x32xf32>
    %c0_1 = arith.constant 0 : index
    %c0_2 = arith.constant 0 : index
    %1 = vector.load %arg2[%c0_1, %c0_2] : memref<32x128xf32, #tpu.memory_space<vmem>>, vector<32x128xf32>
    %cst = arith.constant dense<0.000000e+00> : vector<16x128xf32>
    %2 = tpu.matmul %0, %1, %cst {dimension_numbers = #tpu.dot_dimension_numbers<[1], [0], [0], [1], [0, 0, 1, 1], [], []>} : vector<16x32xf32>, vector<32x128xf32>, vector<16x128xf32> -> vector<16x128xf32>
    %c0_3 = arith.constant 0 : index
    %c0_4 = arith.constant 0 : index
    %3 = vector.load %arg3[%c0_3, %c0_4] : memref<1x128xf32, #tpu.memory_space<vmem>>, vector<1x128xf32>
    %4 = vector.broadcast %3 : vector<1x128xf32> to vector<16x128xf32>
    %5 = arith.addf %2, %4 : vector<16x128xf32>
    %cst_5 = arith.constant 0.000000e+00 : f32
    %6 = vector.broadcast %cst_5 : f32 to vector<16x128xf32>
    %7 = arith.maximumf %5, %6 : vector<16x128xf32>
    %c0_6 = arith.constant 0 : index
    %c0_7 = arith.constant 0 : index
    %8 = vector.load %arg4[%c0_6, %c0_7] : memref<128x32xf32, #tpu.memory_space<vmem>>, vector<128x32xf32>
    %cst_8 = arith.constant dense<0.000000e+00> : vector<16x32xf32>
    %9 = tpu.matmul %7, %8, %cst_8 {dimension_numbers = #tpu.dot_dimension_numbers<[1], [0], [0], [1], [0, 0, 1, 1], [], []>} : vector<16x128xf32>, vector<128x32xf32>, vector<16x32xf32> -> vector<16x32xf32>
    %c0_9 = arith.constant 0 : index
    %c0_10 = arith.constant 0 : index
    %10 = vector.load %arg5[%c0_9, %c0_10] : memref<1x32xf32, #tpu.memory_space<vmem>>, vector<1x32xf32>
    %11 = vector.broadcast %10 : vector<1x32xf32> to vector<16x32xf32>
    %12 = arith.addf %9, %11 : vector<16x32xf32>
    %c0_11 = arith.constant 0 : index
    %c0_12 = arith.constant 0 : index
    %13 = vector.load %arg6[%c0_11, %c0_12] : memref<16x32xf32, #tpu.memory_space<vmem>>, vector<16x32xf32>
    tpu.vector_store %arg6[%c0_11, %c0_12], %12 {strides = array<i32>} : memref<16x32xf32, #tpu.memory_space<vmem>>, vector<16x32xf32>,
    return
  }
  func.func @transform_0(%arg0: i32) -> (i32, i32) {
    %c0_i32 = arith.constant 0 : i32
    %c0_i32_0 = arith.constant 0 : i32
    return %arg0, %c0_i32 : i32, i32
  }
  func.func @transform_1(%arg0: i32) -> (i32, i32) {
    %c0_i32 = arith.constant 0 : i32
    %c0_i32_0 = arith.constant 0 : i32
    %c0_i32_1 = arith.constant 0 : i32
    return %c0_i32, %c0_i32_0 : i32, i32
  }
  func.func @transform_2(%arg0: i32) -> (i32, i32) {
    %c0_i32 = arith.constant 0 : i32
    %c0_i32_0 = arith.constant 0 : i32
    %c0_i32_1 = arith.constant 0 : i32
    return %c0_i32, %c0_i32_0 : i32, i32
  }
  func.func @transform_3(%arg0: i32) -> (i32, i32) {
    %c0_i32 = arith.constant 0 : i32
    %c0_i32_0 = arith.constant 0 : i32
    %c0_i32_1 = arith.constant 0 : i32
    return %c0_i32, %c0_i32_0 : i32, i32
  }
  func.func @transform_4(%arg0: i32) -> (i32, i32) {
    %c0_i32 = arith.constant 0 : i32
    %c0_i32_0 = arith.constant 0 : i32
    %c0_i32_1 = arith.constant 0 : i32
    return %c0_i32, %c0_i32_0 : i32, i32
  }
  func.func @transform_5(%arg0: i32) -> (i32, i32) {
    %c0_i32 = arith.constant 0 : i32
    %c0_i32_0 = arith.constant 0 : i32
    return %arg0, %c0_i32 : i32, i32
  }
}

</mosaic_0001>

<bundles_post_ra>
// kernel: tpu_custom_call.1
= control target key start
LH: loop header
LB: loop body
LE: loop exit
PB: predicated region body
PF: predicated region fallthrough
CT: control target
= control target key end

     0   :  { %vm31_vm0 = vcmask 261120   ;;  %s287_s0 = inlined_call_operand.vmem [shape: f32[16,32], index: 0, kind: input, shape index: {}]   ;;  %s288_s1 = inlined_call_operand.vmem [shape: f32[32,128], index: 1, kind: input, shape index: {}]   ;;  %s289_s2 = inlined_call_operand.vmem [shape: f32[1,128], index: 2, kind: input, shape index: {}]   ;;  %s290_s3 = inlined_call_operand.vmem [shape: f32[128,32], index: 3, kind: input, shape index: {}]   ;;  %s291_s4 = inlined_call_operand.vmem [shape: f32[1,32], index: 4, kind: input, shape index: {}]   ;;  %s292_s5 = inlined_call_operand.hbm [shape: f32[16,32], index: 5, kind: output, shape index: {}]  }
   0x1   :  { %v26_v0 = vld [vmem:[%s288_s1 + $0x18] sm:$0xff]  ;;  %v25_v1 = vld [vmem:[%s288_s1 + $0x10] sm:$0xff]  ;;  %v24_v2 = vld [vmem:[%s288_s1 + $0x8] sm:$0xff] }
   0x2   :  { %50 = vmatpush.msra.mxu0 %v26_v0  ;;  %v78_v3 = vld [vmem:[%s290_s3 + $0x78] sm:$0xff]  ;;  %v77_v4 = vld [vmem:[%s290_s3 + $0x70] sm:$0xff]  ;;  %v23_v5 = vld [vmem:[%s288_s1] sm:$0xff] }
   0x3   :  { %83 = vmatpush.msra.mxu1 %v78_v3  ;;  %v76_v6 = vld [vmem:[%s290_s3 + $0x68] sm:$0xff]  ;;  %128 = vmatpush.msra.mxu2 %v78_v3  ;;  %v21_v7 = vld [vmem:[%s287_s0] sm:$0xff] }
   0x4   :  { %51 = vmatpush.msra.mxu0 %v25_v1  ;;  %v75_v8 = vld [vmem:[%s290_s3 + $0x60] sm:$0xff] }
   0x5   :  { %84 = vmatpush.msra.mxu1 %v77_v4  ;;  %129 = vmatpush.msra.mxu2 %v77_v4 }
   0x6   :  { %52 = vmatpush.msra.mxu0 %v24_v2 }
   0x7   :  { %85 = vmatpush.msra.mxu1 %v76_v6 }
   0x8   :  { %53 = vmatpush.msra.mxu0 %v23_v5 }
   0x9   :  { %10 = vsyncpa [#allocation3], 0  ;;  %126 = vmatmul.msk.f32.vlgmr.msra.gmra.mxu0 %vm31_vm0, %v21_v7  ;;  %v74_v9 = vld [vmem:[%s290_s3 + $0x58] sm:$0xff]  ;;  %130 = vmatpush.msra.mxu2 %v76_v6  ;;  %v73_v10 = vld [vmem:[%s290_s3 + $0x50] sm:$0xff]  ;;  %s114_s15 = sshll.u32 %s292_s5, 4  ;;  %s176_s16 = smov 128   ;;  %s115_s15 = int_to_ptr.hbm [resolvable:$true] %s114_s15 }
   0xa   :  { %86 = vmatpush.msra.mxu1 %v75_v8  ;;  %v72_v11 = vld [vmem:[%s290_s3 + $0x48] sm:$0xff]  ;;  %v71_v13 = vld [vmem:[%s290_s3 + $0x40] sm:$0xff]  ;;  %v70_v14 = vld [vmem:[%s290_s3 + $0x38] sm:$0xff]  ;;  %s177_s17 = smov 8  }
   0xb   :  { %131 = vmatpush.msra.mxu2 %v75_v8  ;;  %v22_v12 = vld [vmem:[%s287_s0 + $0x8] sm:$0xff]  ;;  %v69_v15 = vld [vmem:[%s290_s3 + $0x30] sm:$0xff]  ;;  %v67_v17 = vld [vmem:[%s290_s3 + $0x20] sm:$0xff] }
   0xc   :  { %87 = vmatpush.msra.mxu1 %v74_v9  ;;  %v68_v16 = vld [vmem:[%s290_s3 + $0x28] sm:$0xff]  ;;  %v66_v18 = vld [vmem:[%s290_s3 + $0x18] sm:$0xff]  ;;  %v65_v19 = vld [vmem:[%s290_s3 + $0x10] sm:$0xff] }
   0xd   :  { %132 = vmatpush.msra.mxu2 %v74_v9  ;;  %v64_v20 = vld [vmem:[%s290_s3 + $0x8] sm:$0xff]  ;;  %v63_v21 = vld [vmem:[%s290_s3] sm:$0xff]  ;;  %s175_s3 = smov [#allocation2]  }
   0xe   :  { %88 = vmatpush.msra.mxu1 %v73_v10  ;;  %v147_v22 = vld [vmem:[%s289_s2] ss:$0 sm:$0xff]  ;;  %s112_s13 = sshll.u32 %s175_s3, 4  ;;  %s113_s13 = int_to_ptr.vmem [resolvable:$true] %s112_s13 }
   0xf   :  { %133 = vmatpush.msra.mxu2 %v73_v10  ;;  %v148_v29 = vld [vmem:[%s291_s4] ss:$0 sm:$0xff] }
  0x10   :  { %89 = vmatpush.msra.mxu1 %v72_v11 }
  0x11   :  { %127 = vmatmul.msk.f32.gmra.mxu0 %vm31_vm0, %v22_v12  ;;  %134 = vmatpush.msra.mxu2 %v72_v11 }
  0x12   :  { %90 = vmatpush.msra.mxu1 %v71_v13 }
  0x13   :  { %135 = vmatpush.msra.mxu2 %v71_v13 }
  0x14   :  { %91 = vmatpush.msra.mxu1 %v70_v14 }
  0x15   :  { %136 = vmatpush.msra.mxu2 %v70_v14 }
  0x16   :  { %92 = vmatpush.msra.mxu1 %v69_v15 }
  0x17   :  { %137 = vmatpush.msra.mxu2 %v69_v15 }
  0x18   :  { %93 = vmatpush.msra.mxu1 %v68_v16 }
  0x19   :  { %138 = vmatpush.msra.mxu2 %v68_v16 }
  0x1a   :  { %94 = vmatpush.msra.mxu1 %v67_v17 }
  0x1b   :  { %139 = vmatpush.msra.mxu2 %v67_v17 }
  0x1c   :  { %95 = vmatpush.msra.mxu1 %v66_v18 }
  0x1d   :  { %140 = vmatpush.msra.mxu2 %v66_v18 }
  0x1e   :  { %96 = vmatpush.msra.mxu1 %v65_v19 }
  0x1f   :  { %141 = vmatpush.msra.mxu2 %v65_v19 }
  0x20   :  { %97 = vmatpush.msra.mxu1 %v64_v20 }
  0x21   :  { %142 = vmatpush.msra.mxu2 %v64_v20 }
  0x22   :  { %98 = vmatpush.msra.mxu1 %v63_v21 }
  0x23   :  { %143 = vmatpush.msra.mxu2 %v63_v21 }
  0x86   :  { %v55_v23 = vpop.f32.mrf.mxu0 }
  0x87   :  { %v56_v24 = vadd.f32 %v147_v22, %v55_v23 }
  0x89   :  { %v61_v25 = vmax.f32 %v56_v24, 0.0 }
  0x8b   :  { %99 = vmatmul.f32.vlgmr.msra.gmra.mxu1 %v61_v25 }
  0x8e   :  { %v58_v26 = vpop.f32.mrf.mxu0 }
  0x8f   :  { %v59_v27 = vadd.f32 %v147_v22, %v58_v26 }
  0x91   :  { %v62_v28 = vmax.f32 %v59_v27, 0.0 }
  0x93   :  { %102 = vmatmul.f32.vlgmr.msra.gmra.mxu2 %v62_v28 }
 0x108   :  { %v100_v30 = vpop.f32.mrf.mxu1 }
 0x109   :  { %v101_v31 = vadd.f32 %v148_v29, %v100_v30 }
 0x10b   :  { %106 = vst.msk [vmem:[#allocation2] sm:$0xff] %vm31_vm0, %v101_v31 }
 0x116   :  { %v103_v32 = vpop.f32.mrf.mxu2 }
 0x117   :  { %v104_v33 = vadd.f32 %v148_v29, %v103_v32 }
 0x119   :  { %107 = vst.msk [vmem:[#allocation2 + $0x8] sm:$0xff] %vm31_vm0, %v104_v33 }
 0x11a   :  { %120 = dma.vmem_to_hbm [thread:$0]  %s113_s13, 256, %s115_s15, [#allocation3], %s176_s16, %s176_s16, %s177_s17  }
 0x11b   :  { %173 = dma.done.wait [#allocation3], 256  }
 0x11c   :  { %174 = vsyncadd [#allocation3], 4294967040 }
 0x11d   :  { %125 = vsyncpa [#allocation3], 1 }

</bundles_post_ra>
